<compile_context>
chip_gen: v5e
topology: v5e:2x2
jax: 0.10.0
libtpu: 0.0.40
codegen_flags: <defaults>
</compile_context>

<pallas_src>
import functools
import math

import jax
import jax.numpy as jnp
from jax.experimental import pallas as pl
from jax.experimental.pallas import tpu as pltpu


def _round_up(x, m):
    return ((x + m - 1) // m) * m


def _pad2d(x, rows, cols):
    return jnp.pad(x, ((0, rows - x.shape[0]), (0, cols - x.shape[1])))


def _m3s_fused_kernel(*refs, n_enc_layers):
    """Fused M3S forward.

    refs layout (all full-array VMEM blocks):
      refs[0]           : A_hat       (Np, Np)        bf16  normalized adjacency
      refs[1]           : X           (Np, F0p)       bf16  padded node features
      refs[2 + 2*l]     : W_l         (Fin_p, Fout_p) bf16  l = 0..L-1 encoder,
      refs[3 + 2*l]     : b_l         (1, Fout_p)     f32       l = L classifier
      refs[-2]          : h_out       (Np, Hp)        f32   encoder output
      refs[-1]          : logits_out  (Np, Cp)        f32   classifier output
    """
    n_wb = 2 * (n_enc_layers + 1)
    a_ref, x_ref = refs[0], refs[1]
    wb = refs[2:2 + n_wb]
    h_out, logits_out = refs[2 + n_wb], refs[3 + n_wb]

    a = a_ref[...]                        # bf16 (Np, Np)
    h = x_ref[...]                        # bf16 (Np, F0p)

    # ---------------- GCN encoder (unrolled over layers) ----------------
    z = None
    for l in range(n_enc_layers):
        w = wb[2 * l][...]                # bf16 (Fin_p, Fout_p)
        b = wb[2 * l + 1][...]            # f32  (1, Fout_p)
        fin_p, fout_p = w.shape
        if fin_p > fout_p:
            # Project first (cheaper when the layer narrows): (X @ W) then A@.
            y = jnp.dot(h, w, preferred_element_type=jnp.float32)
            z = jnp.dot(a, y.astype(jnp.bfloat16),
                        preferred_element_type=jnp.float32) + b
        else:
            # Aggregate first (cheaper when the layer widens): (A @ X) then @W.
            y = jnp.dot(a, h, preferred_element_type=jnp.float32)
            z = jnp.dot(y.astype(jnp.bfloat16), w,
                        preferred_element_type=jnp.float32) + b
        if l < n_enc_layers - 1:
            z = jnp.maximum(z, 0.0)       # ReLU; dropout is identity (eval)
        h = z.astype(jnp.bfloat16)

    h_out[...] = z                        # encoder output (no activation)

    # ---------------- classifier: logits = ReLU(h) @ W_c + b_c ----------
    wc = wb[2 * n_enc_layers][...]
    bc = wb[2 * n_enc_layers + 1][...]
    hr = jnp.maximum(z, 0.0).astype(jnp.bfloat16)
    logits_out[...] = jnp.dot(hr, wc, preferred_element_type=jnp.float32) + bc


def m3s_forward(adj, features, enc_params, cls_params):
    """M3S forward: returns (h, logits)."""
    n, in_feats = features.shape
    n_hidden = enc_params[-1][0].shape[1]
    n_classes = cls_params[0].shape[1]

    # Symmetric normalization D^{-1/2} (degrees clamped to >= 1, as in DGL),
    # applied ONCE to A for the whole layer stack.
    deg = jnp.sum(adj, axis=1, keepdims=True)
    norm = 1.0 / jnp.sqrt(jnp.maximum(deg, 1.0))
    a_hat = (norm * adj) * norm.T                    # D^{-1/2} A D^{-1/2}

    n_pad = _round_up(n, 128)
    inputs = [
        _pad2d(a_hat, n_pad, n_pad).astype(jnp.bfloat16),
        _pad2d(features, n_pad, _round_up(in_feats, 128)).astype(jnp.bfloat16),
    ]
    layer_dims = []
    for w, b in list(enc_params) + [cls_params]:
        fin_p = _round_up(w.shape[0], 128)
        fout_p = _round_up(w.shape[1], 128)
        layer_dims.append((fin_p, fout_p))
        inputs.append(_pad2d(w, fin_p, fout_p).astype(jnp.bfloat16))
        inputs.append(_pad2d(b.reshape(1, -1), 1, fout_p).astype(jnp.float32))

    h_pad = _round_up(n_hidden, 128)
    c_pad = _round_up(n_classes, 128)
    out_shape = (
        jax.ShapeDtypeStruct((n_pad, h_pad), jnp.float32),
        jax.ShapeDtypeStruct((n_pad, c_pad), jnp.float32),
    )

    # -------- advisory cost estimate + VMEM headroom (only if needed) --------
    flops = 0
    for fin_p, fout_p in layer_dims[:-1]:
        flops += 2 * n_pad * fin_p * fout_p          # projection
        flops += 2 * n_pad * n_pad * min(fin_p, fout_p)  # aggregation (opt order)
    fin_c, fout_c = layer_dims[-1]
    flops += 2 * n_pad * fin_c * fout_c              # classifier
    in_bytes = sum(int(x.size) * x.dtype.itemsize for x in inputs)
    out_bytes = n_pad * (h_pad + c_pad) * 4
    cost = pl.CostEstimate(flops=flops, transcendentals=0,
                           bytes_accessed=in_bytes + out_bytes)

    max_w = max([inputs[1].shape[1]] + [d for pair in layer_dims for d in pair])
    vmem_needed = in_bytes + out_bytes + 4 * n_pad * max_w * 4  # + live temps
    compiler_params = None
    if vmem_needed > 24 * 1024 * 1024:
        compiler_params = pltpu.CompilerParams(
            vmem_limit_bytes=int(min(vmem_needed * 3 // 2, 100 * 1024 * 1024)))

    kernel = functools.partial(_m3s_fused_kernel, n_enc_layers=len(enc_params))
    h_p, logits_p = pl.pallas_call(
        kernel,
        out_shape=out_shape,
        in_specs=[pl.BlockSpec(memory_space=pltpu.MemorySpace.VMEM)
                  for _ in inputs],
        out_specs=(pl.BlockSpec(memory_space=pltpu.MemorySpace.VMEM),
                   pl.BlockSpec(memory_space=pltpu.MemorySpace.VMEM)),
        cost_estimate=cost,
        compiler_params=compiler_params,
    )(*inputs)

    # Slice the zero padding back off (padding is exact for the real rows/cols).
    return h_p[:n, :n_hidden], logits_p[:n, :n_classes]


def init_m3s_params(key, in_feats, n_hidden, n_classes, n_layers):
    """Encoder = GCN(in_feats, n_hidden, n_hidden, n_layers): xavier-uniform
    weights, zero biases (GraphConv.reset_parameters).  Classifier =
    nn.Linear(n_hidden, n_classes): uniform(+-1/sqrt(fan_in)) weight and bias."""
    enc_params = []
    for i in range(n_layers):
        fin = in_feats if i == 0 else n_hidden
        fout = n_hidden
        key, sub = jax.random.split(key)
        bound = math.sqrt(6.0 / (fin + fout))
        w = jax.random.uniform(sub, (fin, fout), jnp.float32, -bound, bound)
        enc_params.append((w, jnp.zeros((1, fout), jnp.float32)))

    key, kw, kb = jax.random.split(key, 3)
    bound = 1.0 / math.sqrt(n_hidden)
    wc = jax.random.uniform(kw, (n_hidden, n_classes), jnp.float32, -bound, bound)
    bc = jax.random.uniform(kb, (1, n_classes), jnp.float32, -bound, bound)
    return enc_params, (wc, bc)


def m3s_reference(adj, features, enc_params, cls_params):
    """Pure-JAX f32 reference for correctness checking."""
    deg = jnp.sum(adj, axis=1, keepdims=True)
    norm = 1.0 / jnp.sqrt(jnp.maximum(deg, 1.0))
    h = features
    n_layers = len(enc_params)
    for i, (w, b) in enumerate(enc_params):
        h = (norm * (adj @ (norm * h))) @ w + b
        if i != n_layers - 1:
            h = jnp.maximum(h, 0.0)
    wc, bc = cls_params
    logits = jnp.maximum(h, 0.0) @ wc + bc
    return h, logits


if __name__ == "__main__":
    key = jax.random.PRNGKey(0)

    # small synthetic graph / model
    N = 64          # nodes
    IN_FEATS = 32
    N_HIDDEN = 32
    N_CLASSES = 8
    N_LAYERS = 3    # encoder: in->hidden, hidden->hidden, hidden->hidden

    k_adj, k_feat, k_param = jax.random.split(key, 3)

    # random symmetric adjacency with self-loops, ~10% density
    a_rand = jax.random.uniform(k_adj, (N, N), jnp.float32)
    adj = (a_rand < 0.1).astype(jnp.float32)
    adj = jnp.maximum(adj, adj.T)
    adj = jnp.maximum(adj, jnp.eye(N, dtype=jnp.float32))  # self loops

    features = jax.random.normal(k_feat, (N, IN_FEATS), jnp.float32)

    enc_params, cls_params = init_m3s_params(
        k_param, IN_FEATS, N_HIDDEN, N_CLASSES, N_LAYERS)

    h, logits = m3s_forward(adj, features, enc_params, cls_params)
    h = jax.block_until_ready(h)
    logits = jax.block_until_ready(logits)

    h_ref, logits_ref = m3s_reference(adj, features, enc_params, cls_params)

    assert h.shape == (N, N_HIDDEN), h.shape
    assert logits.shape == (N, N_CLASSES), logits.shape
    # bf16 MXU operands with f32 accumulation -> loosened tolerance vs f32 ref
    assert jnp.allclose(h, h_ref, atol=5e-2, rtol=5e-2), "h mismatch vs reference"
    assert jnp.allclose(logits, logits_ref, atol=5e-2, rtol=5e-2), \
        "logits mismatch vs reference"

    print("KERNEL_OK")
</pallas_src>

<mosaic_0001>
module attributes {stable_mosaic.version = 11 : i64} {
  func.func @_m3s_fused_kernel(%arg0: memref<128x128xbf16, #tpu.memory_space<vmem>>, %arg1: memref<128x128xbf16, #tpu.memory_space<vmem>>, %arg2: memref<128x128xbf16, #tpu.memory_space<vmem>>, %arg3: memref<1x128xf32, #tpu.memory_space<vmem>>, %arg4: memref<128x128xbf16, #tpu.memory_space<vmem>>, %arg5: memref<1x128xf32, #tpu.memory_space<vmem>>, %arg6: memref<128x128xbf16, #tpu.memory_space<vmem>>, %arg7: memref<1x128xf32, #tpu.memory_space<vmem>>, %arg8: memref<128x128xbf16, #tpu.memory_space<vmem>>, %arg9: memref<1x128xf32, #tpu.memory_space<vmem>>, %arg10: memref<128x128xf32, #tpu.memory_space<vmem>>, %arg11: memref<128x128xf32, #tpu.memory_space<vmem>>) attributes {dimension_semantics = [], scalar_prefetch = 0 : i64, scratch_operands = 0 : i64, tpu.core_type = #tpu.core_type<tc>} {
    %c0 = arith.constant 0 : index
    %c0_0 = arith.constant 0 : index
    %0 = vector.load %arg0[%c0, %c0_0] : memref<128x128xbf16, #tpu.memory_space<vmem>>, vector<128x128xbf16>
    %c0_1 = arith.constant 0 : index
    %c0_2 = arith.constant 0 : index
    %1 = vector.load %arg1[%c0_1, %c0_2] : memref<128x128xbf16, #tpu.memory_space<vmem>>, vector<128x128xbf16>
    %c0_3 = arith.constant 0 : index
    %c0_4 = arith.constant 0 : index
    %2 = vector.load %arg2[%c0_3, %c0_4] : memref<128x128xbf16, #tpu.memory_space<vmem>>, vector<128x128xbf16>
    %c0_5 = arith.constant 0 : index
    %c0_6 = arith.constant 0 : index
    %3 = vector.load %arg3[%c0_5, %c0_6] : memref<1x128xf32, #tpu.memory_space<vmem>>, vector<1x128xf32>
    %cst = arith.constant dense<0.000000e+00> : vector<128x128xf32>
    %4 = tpu.matmul %0, %1, %cst {dimension_numbers = #tpu.dot_dimension_numbers<[1], [0], [0], [1], [0, 0, 1, 1], [], []>} : vector<128x128xbf16>, vector<128x128xbf16>, vector<128x128xf32> -> vector<128x128xf32>
    %5 = arith.truncf %4 : vector<128x128xf32> to vector<128x128xbf16>
    %cst_7 = arith.constant dense<0.000000e+00> : vector<128x128xf32>
    %6 = tpu.matmul %5, %2, %cst_7 {dimension_numbers = #tpu.dot_dimension_numbers<[1], [0], [0], [1], [0, 0, 1, 1], [], []>} : vector<128x128xbf16>, vector<128x128xbf16>, vector<128x128xf32> -> vector<128x128xf32>
    %7 = vector.broadcast %3 : vector<1x128xf32> to vector<128x128xf32>
    %8 = arith.addf %6, %7 : vector<128x128xf32>
    %cst_8 = arith.constant 0.000000e+00 : f32
    %9 = vector.broadcast %cst_8 : f32 to vector<128x128xf32>
    %10 = arith.maximumf %8, %9 : vector<128x128xf32>
    %11 = arith.truncf %10 : vector<128x128xf32> to vector<128x128xbf16>
    %c0_9 = arith.constant 0 : index
    %c0_10 = arith.constant 0 : index
    %12 = vector.load %arg4[%c0_9, %c0_10] : memref<128x128xbf16, #tpu.memory_space<vmem>>, vector<128x128xbf16>
    %c0_11 = arith.constant 0 : index
    %c0_12 = arith.constant 0 : index
    %13 = vector.load %arg5[%c0_11, %c0_12] : memref<1x128xf32, #tpu.memory_space<vmem>>, vector<1x128xf32>
    %cst_13 = arith.constant dense<0.000000e+00> : vector<128x128xf32>
    %14 = tpu.matmul %0, %11, %cst_13 {dimension_numbers = #tpu.dot_dimension_numbers<[1], [0], [0], [1], [0, 0, 1, 1], [], []>} : vector<128x128xbf16>, vector<128x128xbf16>, vector<128x128xf32> -> vector<128x128xf32>
    %15 = arith.truncf %14 : vector<128x128xf32> to vector<128x128xbf16>
    %cst_14 = arith.constant dense<0.000000e+00> : vector<128x128xf32>
    %16 = tpu.matmul %15, %12, %cst_14 {dimension_numbers = #tpu.dot_dimension_numbers<[1], [0], [0], [1], [0, 0, 1, 1], [], []>} : vector<128x128xbf16>, vector<128x128xbf16>, vector<128x128xf32> -> vector<128x128xf32>
    %17 = vector.broadcast %13 : vector<1x128xf32> to vector<128x128xf32>
    %18 = arith.addf %16, %17 : vector<128x128xf32>
    %cst_15 = arith.constant 0.000000e+00 : f32
    %19 = vector.broadcast %cst_15 : f32 to vector<128x128xf32>
    %20 = arith.maximumf %18, %19 : vector<128x128xf32>
    %21 = arith.truncf %20 : vector<128x128xf32> to vector<128x128xbf16>
    %c0_16 = arith.constant 0 : index
    %c0_17 = arith.constant 0 : index
    %22 = vector.load %arg6[%c0_16, %c0_17] : memref<128x128xbf16, #tpu.memory_space<vmem>>, vector<128x128xbf16>
    %c0_18 = arith.constant 0 : index
    %c0_19 = arith.constant 0 : index
    %23 = vector.load %arg7[%c0_18, %c0_19] : memref<1x128xf32, #tpu.memory_space<vmem>>, vector<1x128xf32>
    %cst_20 = arith.constant dense<0.000000e+00> : vector<128x128xf32>
    %24 = tpu.matmul %0, %21, %cst_20 {dimension_numbers = #tpu.dot_dimension_numbers<[1], [0], [0], [1], [0, 0, 1, 1], [], []>} : vector<128x128xbf16>, vector<128x128xbf16>, vector<128x128xf32> -> vector<128x128xf32>
    %25 = arith.truncf %24 : vector<128x128xf32> to vector<128x128xbf16>
    %cst_21 = arith.constant dense<0.000000e+00> : vector<128x128xf32>
    %26 = tpu.matmul %25, %22, %cst_21 {dimension_numbers = #tpu.dot_dimension_numbers<[1], [0], [0], [1], [0, 0, 1, 1], [], []>} : vector<128x128xbf16>, vector<128x128xbf16>, vector<128x128xf32> -> vector<128x128xf32>
    %27 = vector.broadcast %23 : vector<1x128xf32> to vector<128x128xf32>
    %28 = arith.addf %26, %27 : vector<128x128xf32>
    %c0_22 = arith.constant 0 : index
    %c0_23 = arith.constant 0 : index
    %29 = vector.load %arg10[%c0_22, %c0_23] : memref<128x128xf32, #tpu.memory_space<vmem>>, vector<128x128xf32>
    tpu.vector_store %arg10[%c0_22, %c0_23], %28 {strides = array<i32>} : memref<128x128xf32, #tpu.memory_space<vmem>>, vector<128x128xf32>,
    %c0_24 = arith.constant 0 : index
    %c0_25 = arith.constant 0 : index
    %30 = vector.load %arg8[%c0_24, %c0_25] : memref<128x128xbf16, #tpu.memory_space<vmem>>, vector<128x128xbf16>
    %c0_26 = arith.constant 0 : index
    %c0_27 = arith.constant 0 : index
    %31 = vector.load %arg9[%c0_26, %c0_27] : memref<1x128xf32, #tpu.memory_space<vmem>>, vector<1x128xf32>
    %cst_28 = arith.constant 0.000000e+00 : f32
    %32 = vector.broadcast %cst_28 : f32 to vector<128x128xf32>
    %33 = arith.maximumf %28, %32 : vector<128x128xf32>
    %34 = arith.truncf %33 : vector<128x128xf32> to vector<128x128xbf16>
    %cst_29 = arith.constant dense<0.000000e+00> : vector<128x128xf32>
    %35 = tpu.matmul %34, %30, %cst_29 {dimension_numbers = #tpu.dot_dimension_numbers<[1], [0], [0], [1], [0, 0, 1, 1], [], []>} : vector<128x128xbf16>, vector<128x128xbf16>, vector<128x128xf32> -> vector<128x128xf32>
    %36 = vector.broadcast %31 : vector<1x128xf32> to vector<128x128xf32>
    %37 = arith.addf %35, %36 : vector<128x128xf32>
    %c0_30 = arith.constant 0 : index
    %c0_31 = arith.constant 0 : index
    %38 = vector.load %arg11[%c0_30, %c0_31] : memref<128x128xf32, #tpu.memory_space<vmem>>, vector<128x128xf32>
    tpu.vector_store %arg11[%c0_30, %c0_31], %37 {strides = array<i32>} : memref<128x128xf32, #tpu.memory_space<vmem>>, vector<128x128xf32>,
    return
  }
}

</mosaic_0001>

<bundles_post_ra>
// kernel: tpu_custom_call.1
= control target key start
LH: loop header
LB: loop body
LE: loop exit
PB: predicated region body
PF: predicated region fallthrough
CT: control target
= control target key end

     0   :  { %17 = vsyncpa [#allocation3], 0  ;;  %s1718_s0 = inlined_call_operand.hbm [shape: bf16[128,128], index: 0, kind: input, shape index: {}]   ;;  %s1719_s1 = inlined_call_operand.hbm [shape: bf16[128,128], index: 1, kind: input, shape index: {}]   ;;  %s1720_s2 = inlined_call_operand.hbm [shape: bf16[128,128], index: 2, kind: input, shape index: {}]   ;;  %s1721_s3 = inlined_call_operand.vmem [shape: f32[1,128], index: 3, kind: input, shape index: {}]   ;;  %s1722_s4 = inlined_call_operand.hbm [shape: bf16[128,128], index: 4, kind: input, shape index: {}]   ;;  %s1723_s5 = inlined_call_operand.vmem [shape: f32[1,128], index: 5, kind: input, shape index: {}]   ;;  %s1724_s6 = inlined_call_operand.hbm [shape: bf16[128,128], index: 6, kind: input, shape index: {}]   ;;  %s1725_s7 = inlined_call_operand.vmem [shape: f32[1,128], index: 7, kind: input, shape index: {}]   ;;  %s1726_s8 = inlined_call_operand.hbm [shape: bf16[128,128], index: 8, kind: input, shape index: {}]   ;;  %s1727_s9 = inlined_call_operand.vmem [shape: f32[1,128], index: 9, kind: input, shape index: {}]   ;;  %s1728_s10 = inlined_call_operand.hbm [shape: f32[128,128], index: 10, kind: output, shape index: {0}]   ;;  %s1729_s11 = inlined_call_operand.hbm [shape: f32[128,128], index: 11, kind: output, shape index: {1}]  }
   0x1   :  { %18 = vsyncpa [#allocation6], 0 }
   0x2   :  { %19 = vsyncpa [#allocation9], 0 }
   0x3   :  { %20 = vsyncpa [#allocation12], 0 }
   0x4   :  { %21 = vsyncpa [#allocation4], 0 }
   0x5   :  { %22 = vsyncpa [#allocation15], 0  ;;  %s40_s19 = sshll.u32 %s1719_s1, 4  ;;  %s1528_s20 = smov [#allocation5]   ;;  %s41_s19 = int_to_ptr.hbm [resolvable:$true] %s40_s19 }
   0x6   :  { %s42_s21 = sshll.u32 %s1528_s20, 4  ;;  %s68_s24 = sshll.u32 %s1722_s4, 4  ;;  %s43_s21 = int_to_ptr.vmem [resolvable:$true] %s42_s21  ;;  %s69_s24 = int_to_ptr.hbm [resolvable:$true] %s68_s24 }
   0x7   :  { %s1529_s25 = smov 64   ;;  %s1530_s26 = smov 4  }
   0x8   :  { %48 = dma.hbm_to_vmem [thread:$0]  %s41_s19, 1024, %s43_s21, [#allocation6], %s1529_s25, %s1529_s25, %s1530_s26  }
   0x9   :  { %s1531_s27 = smov [#allocation8]   ;;  %s27_s1 = sshll.u32 %s1718_s0, 4  ;;  %s28_s1 = int_to_ptr.hbm [resolvable:$true] %s27_s1 }
   0xa   :  { %s70_s28 = sshll.u32 %s1531_s27, 4  ;;  %s53_s13 = sshll.u32 %s1720_s2, 4  ;;  %s71_s28 = int_to_ptr.vmem [resolvable:$true] %s70_s28  ;;  %s54_s13 = int_to_ptr.hbm [resolvable:$true] %s53_s13 }
   0xb   :  { %76 = dma.hbm_to_vmem [thread:$0]  %s69_s24, 1024, %s71_s28, [#allocation9], %s1529_s25, %s1529_s25, %s1530_s26  }
   0xc   :  { %s1532_s14 = smov [#allocation2]   ;;  %s1533_s16 = smov [#allocation7]  }
   0xd   :  { %s29_s15 = sshll.u32 %s1532_s14, 4  ;;  %s55_s0 = sshll.u32 %s1533_s16, 4  ;;  %s30_s15 = int_to_ptr.vmem [resolvable:$true] %s29_s15  ;;  %s56_s0 = int_to_ptr.vmem [resolvable:$true] %s55_s0 }
   0xe   :  { %35 = dma.hbm_to_vmem [thread:$0]  %s28_s1, 1024, %s30_s15, [#allocation3], %s1529_s25, %s1529_s25, %s1530_s26  }
   0xf   :  { %s83_s19 = sshll.u32 %s1724_s6, 4  ;;  %s98_s21 = sshll.u32 %s1726_s8, 4  ;;  %s84_s19 = int_to_ptr.hbm [resolvable:$true] %s83_s19  ;;  %s99_s21 = int_to_ptr.hbm [resolvable:$true] %s98_s21 }
  0x10   :  { %61 = dma.hbm_to_vmem [thread:$0]  %s54_s13, 1024, %s56_s0, [#allocation6], %s1529_s25, %s1529_s25, %s1530_s26  }
  0x11   :  { %s1534_s22 = smov [#allocation10]   ;;  %s1535_s24 = smov [#allocation11]  }
  0x12   :  { %s85_s23 = sshll.u32 %s1534_s22, 4  ;;  %s100_s6 = sshll.u32 %s1535_s24, 4  ;;  %s86_s23 = int_to_ptr.vmem [resolvable:$true] %s85_s23  ;;  %s101_s6 = int_to_ptr.vmem [resolvable:$true] %s100_s6 }
  0x13   :  { %91 = dma.hbm_to_vmem [thread:$0]  %s84_s19, 1024, %s86_s23, [#allocation9], %s1529_s25, %s1529_s25, %s1530_s26  }
  0x14   :  { %106 = dma.hbm_to_vmem [thread:$0]  %s99_s21, 1024, %s101_s6, [#allocation12], %s1529_s25, %s1529_s25, %s1530_s26  }
  0x15   :  { %1516 = dma.done.wait [#allocation3], 1024  }
  0x16   :  { %1517 = vsyncadd [#allocation3], 4294966272 }
  0x17   :  { %1518 = dma.done.wait [#allocation6], 2048  }
  0x18   :  { %1519 = vsyncadd [#allocation6], 4294965248 }
  0x19   :  { %1520 = dma.done.wait [#allocation9], 2048  }
  0x1a   :  { %1521 = vsyncadd [#allocation9], 4294965248 }
  0x1b   :  { %1522 = dma.done.wait [#allocation12], 1024  }
  0x1c   :  { %1523 = vsyncadd [#allocation12], 4294966272  ;;  %v1251_v0 = vld [vmem:[#allocation5 + $0x38] sm:$0xff]  ;;  %v1250_v1 = vld [vmem:[#allocation5 + $0x30] sm:$0xff]  ;;  %s1010_s1 = sshll.u32 %s1728_s10, 4  ;;  %s1537_s13 = smov 128   ;;  %s1011_s1 = int_to_ptr.hbm [resolvable:$true] %s1010_s1 }
  0x1d   :  { %1284 = vmatpush.bf16.msra.mxu3 %v1251_v0  ;;  %278 = vmatpush.bf16.msra.mxu0 %v1251_v0  ;;  %v1249_v2 = vld [vmem:[#allocation5 + $0x28] sm:$0xff]  ;;  %v1248_v3 = vld [vmem:[#allocation5 + $0x20] sm:$0xff]  ;;  %v1247_v4 = vld [vmem:[#allocation5 + $0x18] sm:$0xff]  ;;  %s1538_s14 = smov 8   ;;  %s1023_s0 = sshll.u32 %s1729_s11, 4  ;;  %s1024_s0 = int_to_ptr.hbm [resolvable:$true] %s1023_s0 }
  0x1e   :  { %v1246_v5 = vld [vmem:[#allocation5 + $0x10] sm:$0xff]  ;;  %v1245_v6 = vld [vmem:[#allocation5 + $0x8] sm:$0xff]  ;;  %v1244_v7 = vld [vmem:[#allocation5] sm:$0xff] }
  0x1f   :  { %v1636_v8 = vld [vmem:[#allocation2 + $0x10] sm:$0xff]  ;;  %v1639_v9 = vld [vmem:[#allocation2 + $0x18] sm:$0xff]  ;;  %v1642_v10 = vld [vmem:[#allocation2 + $0x20] sm:$0xff] }
  0x20   :  { %v1645_v11 = vld [vmem:[#allocation2] sm:$0xff]  ;;  %v1648_v12 = vld [vmem:[#allocation2 + $0x28] sm:$0xff]  ;;  %v1259_v14 = vld [vmem:[#allocation7 + $0x38] sm:$0xff] }
  0x21   :  { %1285 = vmatpush.bf16.msra.mxu3 %v1250_v1  ;;  %279 = vmatpush.bf16.msra.mxu0 %v1250_v1  ;;  %v1651_v13 = vld [vmem:[#allocation2 + $0x8] sm:$0xff]  ;;  %v1258_v15 = vld [vmem:[#allocation7 + $0x30] sm:$0xff]  ;;  %v1256_v17 = vld [vmem:[#allocation7 + $0x20] sm:$0xff] }
  0x22   :  { %1292 = vmatpush.bf16.msra.mxu1 %v1259_v14  ;;  %v1257_v16 = vld [vmem:[#allocation7 + $0x28] sm:$0xff]  ;;  %v1654_v18 = vld [vmem:[#allocation2 + $0x30] sm:$0xff]  ;;  %v1255_v19 = vld [vmem:[#allocation7 + $0x18] sm:$0xff] }
  0x23   :  { %v1657_v20 = vld [vmem:[#allocation2 + $0x38] sm:$0xff]  ;;  %v1254_v21 = vld [vmem:[#allocation7 + $0x10] sm:$0xff]  ;;  %v1253_v22 = vld [vmem:[#allocation7 + $0x8] sm:$0xff] }
  0x24   :  { %v1252_v23 = vld [vmem:[#allocation7] sm:$0xff] }
  0x25   :  { %1286 = vmatpush.bf16.msra.mxu3 %v1249_v2  ;;  %280 = vmatpush.bf16.msra.mxu0 %v1249_v2  ;;  %v1320_v60 = vld [vmem:[%s1721_s3] ss:$0 sm:$0xff] }
  0x26   :  { %1293 = vmatpush.bf16.msra.mxu1 %v1258_v15 }
  0x29   :  { %1287 = vmatpush.bf16.msra.mxu3 %v1248_v3  ;;  %281 = vmatpush.bf16.msra.mxu0 %v1248_v3 }
  0x2a   :  { %1294 = vmatpush.bf16.msra.mxu1 %v1257_v16 }
  0x2d   :  { %1288 = vmatpush.bf16.msra.mxu3 %v1247_v4  ;;  %282 = vmatpush.bf16.msra.mxu0 %v1247_v4 }
  0x2e   :  { %1295 = vmatpush.bf16.msra.mxu1 %v1256_v17 }
  0x31   :  { %1289 = vmatpush.bf16.msra.mxu3 %v1246_v5  ;;  %283 = vmatpush.bf16.msra.mxu0 %v1246_v5 }
  0x32   :  { %1296 = vmatpush.bf16.msra.mxu1 %v1255_v19 }
  0x35   :  { %1290 = vmatpush.bf16.msra.mxu3 %v1245_v6  ;;  %284 = vmatpush.bf16.msra.mxu0 %v1245_v6 }
  0x36   :  { %1297 = vmatpush.bf16.msra.mxu1 %v1254_v21 }
  0x39   :  { %1291 = vmatpush.bf16.msra.mxu3 %v1244_v7  ;;  %285 = vmatpush.bf16.msra.mxu0 %v1244_v7 }
  0x3a   :  { %1298 = vmatpush.bf16.msra.mxu1 %v1253_v22 }
  0x3c   :  { %296 = vmatmul.bf16.vlgmr.msra.gmra.mxu3 %v1636_v8  ;;  %286 = vmatmul.bf16.vlgmr.msra.gmra.mxu0 %v1645_v11 }
  0x3d   :  { %386 = vmatpush.bf16.msrb.mxu0 %v1259_v14 }
  0x3e   :  { %1299 = vmatpush.bf16.msra.mxu1 %v1252_v23 }
  0x41   :  { %387 = vmatpush.bf16.msrb.mxu0 %v1258_v15 }
  0x45   :  { %388 = vmatpush.bf16.msrb.mxu0 %v1257_v16 }
  0x49   :  { %389 = vmatpush.bf16.msrb.mxu0 %v1256_v17 }
  0x4c   :  { %301 = vmatmul.bf16.gmra.mxu3 %v1639_v9  ;;  %291 = vmatmul.bf16.gmra.mxu0 %v1651_v13 }
  0x4d   :  { %390 = vmatpush.bf16.msrb.mxu0 %v1255_v19 }
  0x51   :  { %391 = vmatpush.bf16.msrb.mxu0 %v1254_v21 }
  0x55   :  { %392 = vmatpush.bf16.msrb.mxu0 %v1253_v22 }
  0x59   :  { %393 = vmatpush.bf16.msrb.mxu0 %v1252_v23 }
  0x5c   :  { %306 = vmatmul.bf16.gmra.mxu3 %v1642_v10 }
  0x6c   :  { %311 = vmatmul.bf16.gmra.mxu3 %v1648_v12 }
  0x7c   :  { %316 = vmatmul.bf16.gmra.mxu3 %v1654_v18 }
  0x8c   :  { %321 = vmatmul.bf16.gmra.mxu3 %v1657_v20 }
  0xb9   :  { %v287_v31 = vpop.f32.mrf.mxu0 }
  0xbf   :  { %v297_v24 = vpop.f32.mrf.mxu3 }
  0xc1   :  { %v289_v34 = vpop.f32.mrf.mxu0 }
  0xc2   :  { %v327_v35 = vpack.c.bf16 %v289_v34, %v287_v31 }
  0xc4   :  { %394 = vmatmul.bf16.vlgmr.msrb.gmra.mxu0 %v327_v35 }
  0xc7   :  { %v299_v25 = vpop.f32.mrf.mxu3 }
  0xc8   :  { %v329_v26 = vpack.c.bf16 %v299_v25, %v297_v24 }
  0xc9   :  { %v292_v37 = vpop.f32.mrf.mxu0 }
  0xca   :  { %404 = vmatmul.bf16.vlgmr.msra.gmra.mxu1 %v329_v26 }
  0xcf   :  { %v302_v27 = vpop.f32.mrf.mxu3 }
  0xd1   :  { %v294_v40 = vpop.f32.mrf.mxu0 }
  0xd2   :  { %v328_v41 = vpack.c.bf16 %v294_v40, %v292_v37  ;;  %v1267_v40 = vld [vmem:[#allocation8 + $0x38] sm:$0xff] }
  0xd3   :  { %584 = vmatpush.bf16.msrb.mxu3 %v1267_v40 }
  0xd4   :  { %399 = vmatmul.bf16.gmra.mxu0 %v328_v41 }
  0xd7   :  { %v304_v28 = vpop.f32.mrf.mxu3 }
  0xd8   :  { %v330_v29 = vpack.c.bf16 %v304_v28, %v302_v27 }
  0xda   :  { %409 = vmatmul.bf16.gmra.mxu1 %v330_v29 }
  0xdf   :  { %v307_v30 = vpop.f32.mrf.mxu3 }
  0xe7   :  { %v309_v32 = vpop.f32.mrf.mxu3 }
  0xe8   :  { %v331_v33 = vpack.c.bf16 %v309_v32, %v307_v30 }
  0xea   :  { %414 = vmatmul.bf16.gmra.mxu1 %v331_v33 }
  0xef   :  { %v312_v36 = vpop.f32.mrf.mxu3 }
  0xf7   :  { %v314_v38 = vpop.f32.mrf.mxu3 }
  0xf8   :  { %v332_v39 = vpack.c.bf16 %v314_v38, %v312_v36 }
  0xfa   :  { %419 = vmatmul.bf16.gmra.mxu1 %v332_v39 }
  0xff   :  { %v317_v42 = vpop.f32.mrf.mxu3 }
 0x107   :  { %v319_v43 = vpop.f32.mrf.mxu3 }
 0x108   :  { %v333_v44 = vpack.c.bf16 %v319_v43, %v317_v42 }
 0x10a   :  { %424 = vmatmul.bf16.gmra.mxu1 %v333_v44 }
 0x10f   :  { %v322_v45 = vpop.f32.mrf.mxu3 }
 0x117   :  { %v324_v46 = vpop.f32.mrf.mxu3 }
 0x118   :  { %v334_v47 = vpack.c.bf16 %v324_v46, %v322_v45 }
 0x11a   :  { %429 = vmatmul.bf16.gmra.mxu1 %v334_v47 }
 0x141   :  { %v395_v58 = vpop.f32.mrf.mxu0 }
 0x142   :  { %v396_v42 = vadd.f32 %v1320_v60, %v395_v58 }
 0x144   :  { %v435_v46 = vmax.f32 %v396_v42, 0.0 }
 0x147   :  { %v405_v48 = vpop.f32.mrf.mxu1 }
 0x148   :  { %v406_v32 = vadd.f32 %v1320_v60, %v405_v48 }
 0x149   :  { %v397_v61 = vpop.f32.mrf.mxu0 }
 0x14a   :  { %v439_v39 = vmax.f32 %v406_v32, 0.0  ;;  %v398_v43 = vadd.f32 %v1320_v60, %v397_v61 }
 0x14c   :  { %v436_v47 = vmax.f32 %v398_v43, 0.0 }
 0x14f   :  { %v407_v49 = vpop.f32.mrf.mxu1 }
 0x150   :  { %v408_v29 = vadd.f32 %v1320_v60, %v407_v49  ;;  %v451_v49 = vpack.c.bf16 %v436_v47, %v435_v46 }
 0x151   :  { %v400_v16 = vpop.f32.mrf.mxu0 }
 0x152   :  { %v440_v35 = vmax.f32 %v408_v29, 0.0  ;;  %v401_v36 = vadd.f32 %v1320_v60, %v400_v16 }
 0x154   :  { %v453_v41 = vpack.c.bf16 %v440_v35, %v439_v39  ;;  %v437_v44 = vmax.f32 %v401_v36, 0.0 }
 0x157   :  { %v410_v50 = vpop.f32.mrf.mxu1 }
 0x158   :  { %v411_v27 = vadd.f32 %v1320_v60, %v410_v50  ;;  %v1266_v50 = vld [vmem:[#allocation8 + $0x30] sm:$0xff] }
 0x159   :  { %v402_v33 = vpop.f32.mrf.mxu0  ;;  %585 = vmatpush.bf16.msrb.mxu3 %v1266_v50 }
 0x15a   :  { %v441_v34 = vmax.f32 %v411_v27, 0.0  ;;  %v403_v37 = vadd.f32 %v1320_v60, %v402_v33 }
 0x15c   :  { %v438_v45 = vmax.f32 %v403_v37, 0.0 }
 0x15e   :  { %v452_v48 = vpack.c.bf16 %v438_v45, %v437_v44 }
 0x15f   :  { %v412_v51 = vpop.f32.mrf.mxu1 }
 0x160   :  { %v413_v24 = vadd.f32 %v1320_v60, %v412_v51  ;;  %v1265_v51 = vld [vmem:[#allocation8 + $0x28] sm:$0xff] }
 0x161   :  { %586 = vmatpush.bf16.msrb.mxu3 %v1265_v51 }
 0x162   :  { %v442_v30 = vmax.f32 %v413_v24, 0.0 }
 0x164   :  { %v454_v38 = vpack.c.bf16 %v442_v30, %v441_v34 }
 0x167   :  { %v415_v52 = vpop.f32.mrf.mxu1 }
 0x168   :  { %v416_v22 = vadd.f32 %v1320_v60, %v415_v52  ;;  %v1264_v52 = vld [vmem:[#allocation8 + $0x20] sm:$0xff] }
 0x169   :  { %587 = vmatpush.bf16.msrb.mxu3 %v1264_v52 }
 0x16a   :  { %v443_v28 = vmax.f32 %v416_v22, 0.0 }
 0x16f   :  { %v417_v53 = vpop.f32.mrf.mxu1 }
 0x170   :  { %v418_v17 = vadd.f32 %v1320_v60, %v417_v53  ;;  %v1263_v53 = vld [vmem:[#allocation8 + $0x18] sm:$0xff] }
 0x171   :  { %588 = vmatpush.bf16.msrb.mxu3 %v1263_v53 }
 0x172   :  { %v444_v25 = vmax.f32 %v418_v17, 0.0 }
 0x174   :  { %v455_v31 = vpack.c.bf16 %v444_v25, %v443_v28 }
 0x177   :  { %v420_v54 = vpop.f32.mrf.mxu1 }
 0x178   :  { %v421_v14 = vadd.f32 %v1320_v60, %v420_v54  ;;  %v1262_v54 = vld [vmem:[#allocation8 + $0x10] sm:$0xff] }
 0x179   :  { %589 = vmatpush.bf16.msrb.mxu3 %v1262_v54 }
 0x17a   :  { %v445_v23 = vmax.f32 %v421_v14, 0.0 }
 0x17f   :  { %v422_v55 = vpop.f32.mrf.mxu1 }
 0x180   :  { %v423_v5 = vadd.f32 %v1320_v60, %v422_v55  ;;  %v1261_v55 = vld [vmem:[#allocation8 + $0x8] sm:$0xff] }
 0x181   :  { %590 = vmatpush.bf16.msrb.mxu3 %v1261_v55 }
 0x182   :  { %v446_v19 = vmax.f32 %v423_v5, 0.0 }
 0x184   :  { %v456_v26 = vpack.c.bf16 %v446_v19, %v445_v23 }
 0x187   :  { %v425_v56 = vpop.f32.mrf.mxu1 }
 0x188   :  { %v426_v2 = vadd.f32 %v1320_v60, %v425_v56  ;;  %v1260_v56 = vld [vmem:[#allocation8] sm:$0xff] }
 0x189   :  { %591 = vmatpush.bf16.msrb.mxu3 %v1260_v56 }
 0x18a   :  { %v447_v15 = vmax.f32 %v426_v2, 0.0 }
 0x18f   :  { %v427_v57 = vpop.f32.mrf.mxu1 }
 0x190   :  { %v428_v0 = vadd.f32 %v1320_v60, %v427_v57 }
 0x192   :  { %v448_v6 = vmax.f32 %v428_v0, 0.0 }
 0x194   :  { %v457_v21 = vpack.c.bf16 %v448_v6, %v447_v15 }
 0x197   :  { %v430_v59 = vpop.f32.mrf.mxu1 }
 0x198   :  { %v431_v62 = vadd.f32 %v1320_v60, %v430_v59 }
 0x19a   :  { %v449_v3 = vmax.f32 %v431_v62, 0.0 }
 0x19f   :  { %v432_v63 = vpop.f32.mrf.mxu1 }
 0x1a0   :  { %v433_v1 = vadd.f32 %v1320_v60, %v432_v63 }
 0x1a2   :  { %v450_v4 = vmax.f32 %v433_v1, 0.0 }
 0x1a4   :  { %v458_v7 = vpack.c.bf16 %v450_v4, %v449_v3 }
 0x1a6   :  { %476 = vmatpush.bf16.msra.mxu0 %v458_v7  ;;  %1300 = vmatpush.bf16.msra.mxu2 %v458_v7 }
 0x1aa   :  { %477 = vmatpush.bf16.msra.mxu0 %v457_v21  ;;  %1301 = vmatpush.bf16.msra.mxu2 %v457_v21 }
 0x1ae   :  { %478 = vmatpush.bf16.msra.mxu0 %v456_v26  ;;  %1302 = vmatpush.bf16.msra.mxu2 %v456_v26  ;;  %v1321_v26 = vld [vmem:[%s1723_s5] ss:$0 sm:$0xff] }
 0x1b2   :  { %479 = vmatpush.bf16.msra.mxu0 %v455_v31  ;;  %1303 = vmatpush.bf16.msra.mxu2 %v455_v31 }
 0x1b6   :  { %480 = vmatpush.bf16.msra.mxu0 %v454_v38  ;;  %1304 = vmatpush.bf16.msra.mxu2 %v454_v38 }
 0x1ba   :  { %481 = vmatpush.bf16.msra.mxu0 %v453_v41  ;;  %1305 = vmatpush.bf16.msra.mxu2 %v453_v41 }
 0x1be   :  { %482 = vmatpush.bf16.msra.mxu0 %v452_v48  ;;  %1306 = vmatpush.bf16.msra.mxu2 %v452_v48 }
 0x1c2   :  { %483 = vmatpush.bf16.msra.mxu0 %v451_v49  ;;  %1307 = vmatpush.bf16.msra.mxu2 %v451_v49 }
 0x1c5   :  { %484 = vmatmul.bf16.vlgmr.msra.gmra.mxu0 %v1645_v11  ;;  %494 = vmatmul.bf16.vlgmr.msra.gmra.mxu2 %v1636_v8 }
 0x1d5   :  { %489 = vmatmul.bf16.gmra.mxu0 %v1651_v13  ;;  %499 = vmatmul.bf16.gmra.mxu2 %v1639_v9 }
 0x1e5   :  { %504 = vmatmul.bf16.gmra.mxu2 %v1642_v10 }
 0x1f5   :  { %509 = vmatmul.bf16.gmra.mxu2 %v1648_v12 }
 0x205   :  { %514 = vmatmul.bf16.gmra.mxu2 %v1654_v18 }
 0x215   :  { %519 = vmatmul.bf16.gmra.mxu2 %v1657_v20 }
 0x242   :  { %v485_v57 = vpop.f32.mrf.mxu0 }
 0x248   :  { %v495_v59 = vpop.f32.mrf.mxu2 }
 0x24a   :  { %v487_v58 = vpop.f32.mrf.mxu0 }
 0x24b   :  { %v525_v60 = vpack.c.bf16 %v487_v58, %v485_v57 }
 0x24d   :  { %592 = vmatmul.bf16.vlgmr.msrb.gmra.mxu3 %v525_v60 }
 0x250   :  { %v497_v62 = vpop.f32.mrf.mxu2 }
 0x251   :  { %v527_v3 = vpack.c.bf16 %v497_v62, %v495_v59 }
 0x252   :  { %v490_v61 = vpop.f32.mrf.mxu0 }
 0x258   :  { %v500_v1 = vpop.f32.mrf.mxu2 }
 0x25a   :  { %v492_v63 = vpop.f32.mrf.mxu0 }
 0x25b   :  { %v526_v0 = vpack.c.bf16 %v492_v63, %v490_v61 }
 0x25d   :  { %597 = vmatmul.bf16.gmra.mxu3 %v526_v0 }
 0x260   :  { %v502_v2 = vpop.f32.mrf.mxu2 }
 0x261   :  { %v528_v5 = vpack.c.bf16 %v502_v2, %v500_v1 }
 0x268   :  { %v505_v4 = vpop.f32.mrf.mxu2 }
 0x26d   :  { %602 = vmatmul.bf16.gmra.mxu3 %v527_v3 }
 0x270   :  { %v507_v6 = vpop.f32.mrf.mxu2 }
 0x271   :  { %v529_v14 = vpack.c.bf16 %v507_v6, %v505_v4 }
 0x278   :  { %v510_v7 = vpop.f32.mrf.mxu2 }
 0x27d   :  { %607 = vmatmul.bf16.gmra.mxu3 %v528_v5 }
 0x280   :  { %v512_v15 = vpop.f32.mrf.mxu2 }
 0x281   :  { %v530_v17 = vpack.c.bf16 %v512_v15, %v510_v7 }
 0x288   :  { %v515_v16 = vpop.f32.mrf.mxu2 }
 0x28d   :  { %612 = vmatmul.bf16.gmra.mxu3 %v529_v14 }
 0x290   :  { %v517_v19 = vpop.f32.mrf.mxu2 }
 0x291   :  { %v531_v21 = vpack.c.bf16 %v517_v19, %v515_v16 }
 0x298   :  { %v520_v22 = vpop.f32.mrf.mxu2 }
 0x29d   :  { %617 = vmatmul.bf16.gmra.mxu3 %v530_v17 }
 0x2a0   :  { %v522_v23 = vpop.f32.mrf.mxu2 }
 0x2a1   :  { %v532_v24 = vpack.c.bf16 %v522_v23, %v520_v22 }
 0x2ad   :  { %622 = vmatmul.bf16.gmra.mxu3 %v531_v21 }
 0x2bd   :  { %627 = vmatmul.bf16.gmra.mxu3 %v532_v24 }
 0x2d0   :  { %v593_v25 = vpop.f32.mrf.mxu3 }
 0x2d1   :  { %v594_v27 = vadd.f32 %v1321_v26, %v593_v25 }
 0x2d3   :  { %v633_v30 = vmax.f32 %v594_v27, 0.0  ;;  %v1275_v27 = vld [vmem:[#allocation10 + $0x38] sm:$0xff] }
 0x2d4   :  { %782 = vmatpush.bf16.msrb.mxu1 %v1275_v27 }
 0x2d8   :  { %v595_v28 = vpop.f32.mrf.mxu3 }
 0x2d9   :  { %v596_v29 = vadd.f32 %v1321_v26, %v595_v28  ;;  %v1274_v28 = vld [vmem:[#allocation10 + $0x30] sm:$0xff] }
 0x2da   :  { %783 = vmatpush.bf16.msrb.mxu1 %v1274_v28 }
 0x2db   :  { %v634_v31 = vmax.f32 %v596_v29, 0.0  ;;  %v1272_v29 = vld [vmem:[#allocation10 + $0x20] sm:$0xff] }
 0x2dd   :  { %v649_v32 = vpack.c.bf16 %v634_v31, %v633_v30  ;;  %v1271_v30 = vld [vmem:[#allocation10 + $0x18] sm:$0xff]  ;;  %v1270_v31 = vld [vmem:[#allocation10 + $0x10] sm:$0xff] }
 0x2e0   :  { %v598_v33 = vpop.f32.mrf.mxu3 }
 0x2e1   :  { %v599_v34 = vadd.f32 %v1321_v26, %v598_v33 }
 0x2e3   :  { %v635_v37 = vmax.f32 %v599_v34, 0.0 }
 0x2e8   :  { %v600_v35 = vpop.f32.mrf.mxu3 }
 0x2e9   :  { %v601_v36 = vadd.f32 %v1321_v26, %v600_v35 }
 0x2eb   :  { %v636_v38 = vmax.f32 %v601_v36, 0.0 }
 0x2ed   :  { %v650_v39 = vpack.c.bf16 %v636_v38, %v635_v37 }
 0x2f0   :  { %v603_v40 = vpop.f32.mrf.mxu3 }
 0x2f1   :  { %v604_v41 = vadd.f32 %v1321_v26, %v603_v40 }
 0x2f3   :  { %v637_v44 = vmax.f32 %v604_v41, 0.0  ;;  %v1280_v41 = vld [vmem:[#allocation11 + $0x20] sm:$0xff] }
 0x2f8   :  { %v605_v42 = vpop.f32.mrf.mxu3 }
 0x2f9   :  { %v606_v43 = vadd.f32 %v1321_v26, %v605_v42 }
 0x2fb   :  { %v638_v45 = vmax.f32 %v606_v43, 0.0 }
 0x2fd   :  { %v651_v46 = vpack.c.bf16 %v638_v45, %v637_v44  ;;  %v1279_v45 = vld [vmem:[#allocation11 + $0x18] sm:$0xff] }
 0x300   :  { %v608_v47 = vpop.f32.mrf.mxu3 }
 0x301   :  { %v609_v48 = vadd.f32 %v1321_v26, %v608_v47  ;;  %v1278_v47 = vld [vmem:[#allocation11 + $0x10] sm:$0xff] }
 0x303   :  { %v639_v51 = vmax.f32 %v609_v48, 0.0 }
 0x308   :  { %v610_v49 = vpop.f32.mrf.mxu3 }
 0x309   :  { %v611_v50 = vadd.f32 %v1321_v26, %v610_v49 }
 0x30b   :  { %v640_v52 = vmax.f32 %v611_v50, 0.0  ;;  %v1277_v50 = vld [vmem:[#allocation11 + $0x8] sm:$0xff] }
 0x30d   :  { %v652_v53 = vpack.c.bf16 %v640_v52, %v639_v51 }
 0x310   :  { %v613_v54 = vpop.f32.mrf.mxu3 }
 0x311   :  { %v614_v19 = vadd.f32 %v1321_v26, %v613_v54  ;;  %v1276_v54 = vld [vmem:[#allocation11] sm:$0xff] }
 0x313   :  { %v641_v24 = vmax.f32 %v614_v19, 0.0 }
 0x318   :  { %v615_v55 = vpop.f32.mrf.mxu3 }
 0x319   :  { %v616_v15 = vadd.f32 %v1321_v26, %v615_v55 }
 0x31b   :  { %v642_v22 = vmax.f32 %v616_v15, 0.0 }
 0x31d   :  { %v653_v25 = vpack.c.bf16 %v642_v22, %v641_v24 }
 0x320   :  { %v618_v56 = vpop.f32.mrf.mxu3 }
 0x321   :  { %v619_v7 = vadd.f32 %v1321_v26, %v618_v56 }
 0x323   :  { %v643_v21 = vmax.f32 %v619_v7, 0.0 }
 0x328   :  { %v620_v57 = vpop.f32.mrf.mxu3 }
 0x329   :  { %v621_v4 = vadd.f32 %v1321_v26, %v620_v57 }
 0x32b   :  { %v644_v16 = vmax.f32 %v621_v4, 0.0 }
 0x32d   :  { %v654_v23 = vpack.c.bf16 %v644_v16, %v643_v21 }
 0x330   :  { %v623_v58 = vpop.f32.mrf.mxu3 }
 0x331   :  { %v624_v1 = vadd.f32 %v1321_v26, %v623_v58  ;;  %v1685_v58 = vld [vmem:[%s1725_s7] ss:$0 sm:$0xff]  ;;  %s1536_s7 = smov [#allocation13]  }
 0x332   :  { %s1008_s28 = sshll.u32 %s1536_s7, 4  ;;  %s1009_s28 = int_to_ptr.vmem [resolvable:$true] %s1008_s28 }
 0x333   :  { %v645_v14 = vmax.f32 %v624_v1, 0.0 }
 0x338   :  { %v625_v59 = vpop.f32.mrf.mxu3 }
 0x339   :  { %v626_v63 = vadd.f32 %v1321_v26, %v625_v59 }
 0x33b   :  { %v646_v5 = vmax.f32 %v626_v63, 0.0 }
 0x33d   :  { %v655_v17 = vpack.c.bf16 %v646_v5, %v645_v14 }
 0x340   :  { %v628_v60 = vpop.f32.mrf.mxu3 }
 0x341   :  { %v629_v61 = vadd.f32 %v1321_v26, %v628_v60 }
 0x343   :  { %v647_v2 = vmax.f32 %v629_v61, 0.0 }
 0x348   :  { %v630_v62 = vpop.f32.mrf.mxu3 }
 0x349   :  { %v631_v0 = vadd.f32 %v1321_v26, %v630_v62  ;;  %v1273_v26 = vld [vmem:[#allocation10 + $0x28] sm:$0xff] }
 0x34a   :  { %784 = vmatpush.bf16.msrb.mxu1 %v1273_v26 }
 0x34b   :  { %v648_v3 = vmax.f32 %v631_v0, 0.0 }
 0x34d   :  { %v656_v6 = vpack.c.bf16 %v648_v3, %v647_v2 }
 0x34e   :  { %785 = vmatpush.bf16.msrb.mxu1 %v1272_v29 }
 0x34f   :  { %674 = vmatpush.bf16.msrb.mxu0 %v656_v6 }
 0x352   :  { %786 = vmatpush.bf16.msrb.mxu1 %v1271_v30 }
 0x353   :  { %675 = vmatpush.bf16.msrb.mxu0 %v655_v17 }
 0x356   :  { %787 = vmatpush.bf16.msrb.mxu1 %v1270_v31 }
 0x357   :  { %676 = vmatpush.bf16.msrb.mxu0 %v654_v23 }
 0x35b   :  { %677 = vmatpush.bf16.msrb.mxu0 %v653_v25 }
 0x35f   :  { %678 = vmatpush.bf16.msrb.mxu0 %v652_v53 }
 0x363   :  { %679 = vmatpush.bf16.msrb.mxu0 %v651_v46 }
 0x367   :  { %680 = vmatpush.bf16.msrb.mxu0 %v650_v39 }
 0x36b   :  { %681 = vmatpush.bf16.msrb.mxu0 %v649_v32 }
 0x36e   :  { %682 = vmatmul.bf16.vlgmr.msrb.gmra.mxu0 %v1645_v11  ;;  %v1269_v11 = vld [vmem:[#allocation10 + $0x8] sm:$0xff] }
 0x36f   :  { %788 = vmatpush.bf16.msrb.mxu1 %v1269_v11 }
 0x37e   :  { %687 = vmatmul.bf16.gmra.mxu0 %v1651_v13  ;;  %v1268_v13 = vld [vmem:[#allocation10] sm:$0xff] }
 0x37f   :  { %789 = vmatpush.bf16.msrb.mxu1 %v1268_v13 }
 0x38e   :  { %692 = vmatmul.bf16.gmra.mxu0 %v1636_v8 }
 0x39e   :  { %697 = vmatmul.bf16.gmra.mxu0 %v1639_v9 }
 0x3ae   :  { %702 = vmatmul.bf16.gmra.mxu0 %v1642_v10  ;;  %v1283_v10 = vld [vmem:[#allocation11 + $0x38] sm:$0xff] }
 0x3af   :  { %939 = vmatpush.bf16.msrb.mxu2 %v1283_v10 }
 0x3be   :  { %707 = vmatmul.bf16.gmra.mxu0 %v1648_v12  ;;  %v1282_v12 = vld [vmem:[#allocation11 + $0x30] sm:$0xff] }
 0x3bf   :  { %940 = vmatpush.bf16.msrb.mxu2 %v1282_v12 }
 0x3ce   :  { %712 = vmatmul.bf16.gmra.mxu0 %v1654_v18  ;;  %v1281_v18 = vld [vmem:[#allocation11 + $0x28] sm:$0xff] }
 0x3cf   :  { %941 = vmatpush.bf16.msrb.mxu2 %v1281_v18 }
 0x3d3   :  { %942 = vmatpush.bf16.msrb.mxu2 %v1280_v41 }
 0x3d7   :  { %943 = vmatpush.bf16.msrb.mxu2 %v1279_v45 }
 0x3db   :  { %944 = vmatpush.bf16.msrb.mxu2 %v1278_v47 }
 0x3de   :  { %717 = vmatmul.bf16.gmra.mxu0 %v1657_v20 }
 0x3df   :  { %945 = vmatpush.bf16.msrb.mxu2 %v1277_v50 }
 0x3e3   :  { %946 = vmatpush.bf16.msrb.mxu2 %v1276_v54 }
 0x3eb   :  { %v683_v8 = vpop.f32.mrf.mxu0 }
 0x3f3   :  { %v685_v32 = vpop.f32.mrf.mxu0 }
 0x3f4   :  { %v723_v33 = vpack.c.bf16 %v685_v32, %v683_v8 }
 0x3f6   :  { %790 = vmatmul.bf16.vlgmr.msrb.gmra.mxu1 %v723_v33 }
 0x3fb   :  { %v688_v9 = vpop.f32.mrf.mxu0 }
 0x403   :  { %v690_v34 = vpop.f32.mrf.mxu0 }
 0x404   :  { %v724_v35 = vpack.c.bf16 %v690_v34, %v688_v9 }
 0x406   :  { %795 = vmatmul.bf16.gmra.mxu1 %v724_v35 }
 0x40b   :  { %v693_v36 = vpop.f32.mrf.mxu0 }
 0x413   :  { %v695_v37 = vpop.f32.mrf.mxu0 }
 0x414   :  { %v725_v38 = vpack.c.bf16 %v695_v37, %v693_v36 }
 0x416   :  { %800 = vmatmul.bf16.gmra.mxu1 %v725_v38 }
 0x41b   :  { %v698_v39 = vpop.f32.mrf.mxu0 }
 0x423   :  { %v700_v20 = vpop.f32.mrf.mxu0 }
 0x424   :  { %v726_v40 = vpack.c.bf16 %v700_v20, %v698_v39 }
 0x426   :  { %805 = vmatmul.bf16.gmra.mxu1 %v726_v40 }
 0x42b   :  { %v703_v42 = vpop.f32.mrf.mxu0 }
 0x433   :  { %v705_v43 = vpop.f32.mrf.mxu0 }
 0x434   :  { %v727_v44 = vpack.c.bf16 %v705_v43, %v703_v42 }
 0x436   :  { %810 = vmatmul.bf16.gmra.mxu1 %v727_v44 }
 0x43b   :  { %v708_v46 = vpop.f32.mrf.mxu0 }
 0x443   :  { %v710_v48 = vpop.f32.mrf.mxu0 }
 0x444   :  { %v728_v49 = vpack.c.bf16 %v710_v48, %v708_v46 }
 0x446   :  { %815 = vmatmul.bf16.gmra.mxu1 %v728_v49 }
 0x44b   :  { %v713_v51 = vpop.f32.mrf.mxu0 }
 0x453   :  { %v715_v52 = vpop.f32.mrf.mxu0 }
 0x454   :  { %v729_v53 = vpack.c.bf16 %v715_v52, %v713_v51  ;;  %v1323_v51 = vld [vmem:[%s1727_s9] ss:$0 sm:$0xff]  ;;  %s1539_s9 = smov [#allocation14]  }
 0x455   :  { %s1021_s10 = sshll.u32 %s1539_s9, 4  ;;  %s1022_s10 = int_to_ptr.vmem [resolvable:$true] %s1021_s10 }
 0x456   :  { %820 = vmatmul.bf16.gmra.mxu1 %v729_v53 }
 0x45b   :  { %v718_v55 = vpop.f32.mrf.mxu0 }
 0x463   :  { %v720_v56 = vpop.f32.mrf.mxu0 }
 0x464   :  { %v730_v57 = vpack.c.bf16 %v720_v56, %v718_v55 }
 0x466   :  { %825 = vmatmul.bf16.gmra.mxu1 %v730_v57 }
 0x473   :  { %v791_v59 = vpop.f32.mrf.mxu1 }
 0x474   :  { %v792_v60 = vadd.f32 %v1685_v58, %v791_v59 }
 0x476   :  { %831 = vst [vmem:[#allocation13] sm:$0xff] %v792_v60  ;;  %v864_v63 = vmax.f32 %v792_v60, 0.0 }
 0x47b   :  { %v793_v61 = vpop.f32.mrf.mxu1 }
 0x47c   :  { %v794_v62 = vadd.f32 %v1685_v58, %v793_v61 }
 0x47e   :  { %832 = vst [vmem:[#allocation13 + $0x8] sm:$0xff] %v794_v62  ;;  %v865_v0 = vmax.f32 %v794_v62, 0.0 }
 0x480   :  { %v880_v1 = vpack.c.bf16 %v865_v0, %v864_v63 }
 0x482   :  { %947 = vmatmul.bf16.vlgmr.msrb.gmra.mxu2 %v880_v1 }
 0x483   :  { %v796_v2 = vpop.f32.mrf.mxu1 }
 0x484   :  { %v797_v3 = vadd.f32 %v1685_v58, %v796_v2 }
 0x486   :  { %833 = vst [vmem:[#allocation13 + $0x10] sm:$0xff] %v797_v3  ;;  %v866_v6 = vmax.f32 %v797_v3, 0.0 }
 0x48b   :  { %v798_v4 = vpop.f32.mrf.mxu1 }
 0x48c   :  { %v799_v5 = vadd.f32 %v1685_v58, %v798_v4 }
 0x48e   :  { %834 = vst [vmem:[#allocation13 + $0x18] sm:$0xff] %v799_v5  ;;  %v867_v7 = vmax.f32 %v799_v5, 0.0 }
 0x490   :  { %v881_v14 = vpack.c.bf16 %v867_v7, %v866_v6 }
 0x492   :  { %952 = vmatmul.bf16.gmra.mxu2 %v881_v14 }
 0x493   :  { %v801_v15 = vpop.f32.mrf.mxu1 }
 0x494   :  { %v802_v16 = vadd.f32 %v1685_v58, %v801_v15 }
 0x496   :  { %835 = vst [vmem:[#allocation13 + $0x20] sm:$0xff] %v802_v16  ;;  %v868_v21 = vmax.f32 %v802_v16, 0.0 }
 0x49b   :  { %v803_v17 = vpop.f32.mrf.mxu1 }
 0x49c   :  { %v804_v19 = vadd.f32 %v1685_v58, %v803_v17 }
 0x49e   :  { %836 = vst [vmem:[#allocation13 + $0x28] sm:$0xff] %v804_v19  ;;  %v869_v22 = vmax.f32 %v804_v19, 0.0 }
 0x4a0   :  { %v882_v23 = vpack.c.bf16 %v869_v22, %v868_v21 }
 0x4a2   :  { %957 = vmatmul.bf16.gmra.mxu2 %v882_v23 }
 0x4a3   :  { %v806_v24 = vpop.f32.mrf.mxu1 }
 0x4a4   :  { %v807_v25 = vadd.f32 %v1685_v58, %v806_v24 }
 0x4a6   :  { %837 = vst [vmem:[#allocation13 + $0x30] sm:$0xff] %v807_v25  ;;  %v870_v26 = vmax.f32 %v807_v25, 0.0 }
 0x4ab   :  { %v808_v27 = vpop.f32.mrf.mxu1 }
 0x4ac   :  { %v809_v28 = vadd.f32 %v1685_v58, %v808_v27 }
 0x4ae   :  { %838 = vst [vmem:[#allocation13 + $0x38] sm:$0xff] %v809_v28  ;;  %v871_v29 = vmax.f32 %v809_v28, 0.0 }
 0x4b0   :  { %v883_v30 = vpack.c.bf16 %v871_v29, %v870_v26 }
 0x4b2   :  { %962 = vmatmul.bf16.gmra.mxu2 %v883_v30 }
 0x4b3   :  { %v811_v31 = vpop.f32.mrf.mxu1 }
 0x4b4   :  { %v812_v11 = vadd.f32 %v1685_v58, %v811_v31 }
 0x4b6   :  { %839 = vst [vmem:[#allocation13 + $0x40] sm:$0xff] %v812_v11  ;;  %v872_v32 = vmax.f32 %v812_v11, 0.0 }
 0x4bb   :  { %v813_v13 = vpop.f32.mrf.mxu1 }
 0x4bc   :  { %v814_v8 = vadd.f32 %v1685_v58, %v813_v13 }
 0x4be   :  { %840 = vst [vmem:[#allocation13 + $0x48] sm:$0xff] %v814_v8  ;;  %v873_v33 = vmax.f32 %v814_v8, 0.0 }
 0x4c0   :  { %v884_v9 = vpack.c.bf16 %v873_v33, %v872_v32 }
 0x4c2   :  { %967 = vmatmul.bf16.gmra.mxu2 %v884_v9 }
 0x4c3   :  { %v816_v34 = vpop.f32.mrf.mxu1 }
 0x4c4   :  { %v817_v35 = vadd.f32 %v1685_v58, %v816_v34 }
 0x4c6   :  { %841 = vst [vmem:[#allocation13 + $0x50] sm:$0xff] %v817_v35  ;;  %v874_v12 = vmax.f32 %v817_v35, 0.0 }
 0x4cb   :  { %v818_v10 = vpop.f32.mrf.mxu1 }
 0x4cc   :  { %v819_v36 = vadd.f32 %v1685_v58, %v818_v10 }
 0x4ce   :  { %842 = vst [vmem:[#allocation13 + $0x58] sm:$0xff] %v819_v36  ;;  %v875_v37 = vmax.f32 %v819_v36, 0.0 }
 0x4d0   :  { %v885_v38 = vpack.c.bf16 %v875_v37, %v874_v12 }
 0x4d2   :  { %972 = vmatmul.bf16.gmra.mxu2 %v885_v38 }
 0x4d3   :  { %v821_v39 = vpop.f32.mrf.mxu1 }
 0x4d4   :  { %v822_v18 = vadd.f32 %v1685_v58, %v821_v39 }
 0x4d6   :  { %843 = vst [vmem:[#allocation13 + $0x60] sm:$0xff] %v822_v18  ;;  %v876_v41 = vmax.f32 %v822_v18, 0.0 }
 0x4db   :  { %v823_v20 = vpop.f32.mrf.mxu1 }
 0x4dc   :  { %v824_v40 = vadd.f32 %v1685_v58, %v823_v20 }
 0x4de   :  { %844 = vst [vmem:[#allocation13 + $0x68] sm:$0xff] %v824_v40  ;;  %v877_v42 = vmax.f32 %v824_v40, 0.0 }
 0x4e0   :  { %v886_v43 = vpack.c.bf16 %v877_v42, %v876_v41 }
 0x4e2   :  { %977 = vmatmul.bf16.gmra.mxu2 %v886_v43 }
 0x4e3   :  { %v826_v44 = vpop.f32.mrf.mxu1 }
 0x4e4   :  { %v827_v45 = vadd.f32 %v1685_v58, %v826_v44 }
 0x4e6   :  { %845 = vst [vmem:[#allocation13 + $0x70] sm:$0xff] %v827_v45  ;;  %v878_v48 = vmax.f32 %v827_v45, 0.0 }
 0x4eb   :  { %v828_v46 = vpop.f32.mrf.mxu1 }
 0x4ec   :  { %v829_v47 = vadd.f32 %v1685_v58, %v828_v46 }
 0x4ee   :  { %846 = vst [vmem:[#allocation13 + $0x78] sm:$0xff] %v829_v47  ;;  %v879_v49 = vmax.f32 %v829_v47, 0.0 }
 0x4ef   :  { %1016 = dma.vmem_to_hbm [thread:$0]  %s1009_s28, 2048, %s1011_s1, [#allocation4], %s1537_s13, %s1537_s13, %s1538_s14  }
 0x4f0   :  { %v887_v50 = vpack.c.bf16 %v879_v49, %v878_v48 }
 0x4f2   :  { %982 = vmatmul.bf16.gmra.mxu2 %v887_v50 }
 0x505   :  { %v948_v52 = vpop.f32.mrf.mxu2 }
 0x506   :  { %v949_v53 = vadd.f32 %v1323_v51, %v948_v52 }
 0x508   :  { %988 = vst [vmem:[#allocation14] sm:$0xff] %v949_v53 }
 0x50d   :  { %v950_v54 = vpop.f32.mrf.mxu2 }
 0x50e   :  { %v951_v55 = vadd.f32 %v1323_v51, %v950_v54 }
 0x510   :  { %989 = vst [vmem:[#allocation14 + $0x8] sm:$0xff] %v951_v55 }
 0x515   :  { %v953_v56 = vpop.f32.mrf.mxu2 }
 0x516   :  { %v954_v57 = vadd.f32 %v1323_v51, %v953_v56 }
 0x518   :  { %990 = vst [vmem:[#allocation14 + $0x10] sm:$0xff] %v954_v57 }
 0x51d   :  { %v955_v58 = vpop.f32.mrf.mxu2 }
 0x51e   :  { %v956_v59 = vadd.f32 %v1323_v51, %v955_v58 }
 0x520   :  { %991 = vst [vmem:[#allocation14 + $0x18] sm:$0xff] %v956_v59 }
 0x525   :  { %v958_v60 = vpop.f32.mrf.mxu2 }
 0x526   :  { %v959_v61 = vadd.f32 %v1323_v51, %v958_v60 }
 0x528   :  { %992 = vst [vmem:[#allocation14 + $0x20] sm:$0xff] %v959_v61 }
 0x52d   :  { %v960_v62 = vpop.f32.mrf.mxu2 }
 0x52e   :  { %v961_v63 = vadd.f32 %v1323_v51, %v960_v62 }
 0x530   :  { %993 = vst [vmem:[#allocation14 + $0x28] sm:$0xff] %v961_v63 }
 0x535   :  { %v963_v0 = vpop.f32.mrf.mxu2 }
 0x536   :  { %v964_v1 = vadd.f32 %v1323_v51, %v963_v0 }
 0x538   :  { %994 = vst [vmem:[#allocation14 + $0x30] sm:$0xff] %v964_v1 }
 0x53d   :  { %v965_v2 = vpop.f32.mrf.mxu2 }
 0x53e   :  { %v966_v3 = vadd.f32 %v1323_v51, %v965_v2 }
 0x540   :  { %995 = vst [vmem:[#allocation14 + $0x38] sm:$0xff] %v966_v3 }
 0x545   :  { %v968_v4 = vpop.f32.mrf.mxu2 }
 0x546   :  { %v969_v5 = vadd.f32 %v1323_v51, %v968_v4 }
 0x548   :  { %996 = vst [vmem:[#allocation14 + $0x40] sm:$0xff] %v969_v5 }
 0x54d   :  { %v970_v6 = vpop.f32.mrf.mxu2 }
 0x54e   :  { %v971_v7 = vadd.f32 %v1323_v51, %v970_v6 }
 0x550   :  { %997 = vst [vmem:[#allocation14 + $0x48] sm:$0xff] %v971_v7 }
 0x555   :  { %v973_v14 = vpop.f32.mrf.mxu2 }
 0x556   :  { %v974_v15 = vadd.f32 %v1323_v51, %v973_v14 }
 0x558   :  { %998 = vst [vmem:[#allocation14 + $0x50] sm:$0xff] %v974_v15 }
 0x55d   :  { %v975_v16 = vpop.f32.mrf.mxu2 }
 0x55e   :  { %v976_v17 = vadd.f32 %v1323_v51, %v975_v16 }
 0x560   :  { %999 = vst [vmem:[#allocation14 + $0x58] sm:$0xff] %v976_v17 }
 0x565   :  { %v978_v19 = vpop.f32.mrf.mxu2 }
 0x566   :  { %v979_v21 = vadd.f32 %v1323_v51, %v978_v19 }
 0x568   :  { %1000 = vst [vmem:[#allocation14 + $0x60] sm:$0xff] %v979_v21 }
 0x56d   :  { %v980_v22 = vpop.f32.mrf.mxu2 }
 0x56e   :  { %v981_v23 = vadd.f32 %v1323_v51, %v980_v22 }
 0x570   :  { %1001 = vst [vmem:[#allocation14 + $0x68] sm:$0xff] %v981_v23 }
 0x575   :  { %v983_v24 = vpop.f32.mrf.mxu2 }
 0x576   :  { %v984_v25 = vadd.f32 %v1323_v51, %v983_v24 }
 0x578   :  { %1002 = vst [vmem:[#allocation14 + $0x70] sm:$0xff] %v984_v25 }
 0x57d   :  { %v985_v27 = vpop.f32.mrf.mxu2 }
 0x57e   :  { %v986_v28 = vadd.f32 %v1323_v51, %v985_v27 }
 0x580   :  { %1003 = vst [vmem:[#allocation14 + $0x78] sm:$0xff] %v986_v28 }
 0x581   :  { %1029 = dma.vmem_to_hbm [thread:$0]  %s1022_s10, 2048, %s1024_s0, [#allocation15], %s1537_s13, %s1537_s13, %s1538_s14  }
 0x582   :  { %1524 = dma.done.wait [#allocation4], 2048  }
 0x583   :  { %1525 = vsyncadd [#allocation4], 4294965248 }
 0x584   :  { %1526 = dma.done.wait [#allocation15], 2048  }
 0x585   :  { %1527 = vsyncadd [#allocation15], 4294965248 }
 0x586   :  { %1038 = vsyncpa [#allocation3], 1 }
 0x587   :  { %1039 = vsyncpa [#allocation6], 1 }
 0x588   :  { %1040 = vsyncpa [#allocation9], 1 }
 0x589   :  { %1041 = vsyncpa [#allocation12], 1 }
 0x58a   :  { %1042 = vsyncpa [#allocation4], 1 }
 0x58b   :  { %1043 = vsyncpa [#allocation15], 1 }

</bundles_post_ra>
